<compile_context>
chip_gen: v5e
topology: v5e:2x2
jax: 0.10.0
libtpu: 0.0.40
codegen_flags: <defaults>
</compile_context>

<pallas_src>
import functools

import jax
import jax.numpy as jnp
from jax import lax
from jax.experimental import pallas as pl
from jax.experimental.pallas import tpu as pltpu


def _round_up(x, m):
    return ((x + m - 1) // m) * m


def _stats_kernel(x_ref, w1_ref, b1_ref, w2_ref, b2_ref, sum_ref, sq_ref,
                  *, hw, tp, mask_needed):
    """Pass 1: accumulate global per-channel sum / sum-of-squares of h2."""
    @pl.when(jnp.logical_and(pl.program_id(0) == 0, pl.program_id(1) == 0))
    def _():
        sum_ref[...] = jnp.zeros_like(sum_ref)
        sq_ref[...] = jnp.zeros_like(sq_ref)

    x = x_ref[...]                                               # (C, TP)
    h1 = jnp.dot(w1_ref[...], x, preferred_element_type=jnp.float32) + b1_ref[...]
    h1 = jnp.where(h1 >= 0, h1, 0.2 * h1)                        # LeakyReLU(0.2)
    h2 = jnp.dot(w2_ref[...], h1, preferred_element_type=jnp.float32) + b2_ref[...]

    if mask_needed:
        # Zero out padded pixels so they do not pollute the batch statistics.
        pos = pl.program_id(1) * tp + lax.broadcasted_iota(jnp.int32, (1, tp), 1)
        h2 = jnp.where(pos < hw, h2, 0.0)

    sum_ref[...] += jnp.sum(h2, axis=1, keepdims=True)           # (2*ndf, 1)
    sq_ref[...] += jnp.sum(h2 * h2, axis=1, keepdims=True)       # (2*ndf, 1)


def _apply_kernel(x_ref, w1_ref, b1_ref, w2_ref, b2_ref,
                  scale_ref, shift_ref, w3_ref, b3_ref, o_ref):
    """Pass 2: recompute h2 per tile, apply folded BN + LeakyReLU + conv3."""
    x = x_ref[...]                                               # (C, TP)
    h1 = jnp.dot(w1_ref[...], x, preferred_element_type=jnp.float32) + b1_ref[...]
    h1 = jnp.where(h1 >= 0, h1, 0.2 * h1)
    h2 = jnp.dot(w2_ref[...], h1, preferred_element_type=jnp.float32) + b2_ref[...]
    h2 = h2 * scale_ref[...] + shift_ref[...]                    # folded BatchNorm
    h2 = jnp.where(h2 >= 0, h2, 0.2 * h2)
    o_ref[...] = (jnp.dot(w3_ref[...], h2, preferred_element_type=jnp.float32)
                  + b3_ref[...])                                 # (1, TP)


def pixel_discriminator(x_nchw, params, *, tile_pixels=4096):
    """x_nchw: (N, C, H, W) float32. Returns (N, 1, H, W) float32."""
    n, c, h, w = x_nchw.shape
    hw = h * w
    (w1, b1, w2, b2, gamma, beta, w3, b3) = params
    ndf2 = w2.shape[0]

    # Lane-dim tile: a multiple of 128 (or the full, already-aligned extent).
    tp = min(tile_pixels, _round_up(hw, 128))
    hw_pad = _round_up(hw, tp)

    # NCHW -> (N, C, HW): pure reshape, no HBM transpose.
    x3 = x_nchw.reshape(n, c, hw)
    if hw_pad != hw:
        x3 = jnp.pad(x3, ((0, 0), (0, 0), (0, hw_pad - hw)))

    grid = (n, hw_pad // tp)
    x_spec = pl.BlockSpec((None, c, tp), lambda b, t: (b, 0, t))

    def full(shape):
        return pl.BlockSpec(shape, lambda b, t: (0, 0))

    vmem_limit = 32 * 1024 * 1024
    cparams_acc = pltpu.CompilerParams(
        dimension_semantics=("arbitrary", "arbitrary"),
        vmem_limit_bytes=vmem_limit)
    cparams_par = pltpu.CompilerParams(
        dimension_semantics=("parallel", "parallel"),
        vmem_limit_bytes=vmem_limit)

    # ---- Pass 1: global BatchNorm statistics of h2 ----
    stats_kernel = functools.partial(
        _stats_kernel, hw=hw, tp=tp, mask_needed=(hw_pad != hw))
    ch_sum, ch_sq = pl.pallas_call(
        stats_kernel,
        grid=grid,
        in_specs=[x_spec, full(w1.shape), full(b1.shape),
                  full(w2.shape), full(b2.shape)],
        out_specs=(pl.BlockSpec((ndf2, 1), lambda b, t: (0, 0)),
                   pl.BlockSpec((ndf2, 1), lambda b, t: (0, 0))),
        out_shape=(jax.ShapeDtypeStruct((ndf2, 1), jnp.float32),
                   jax.ShapeDtypeStruct((ndf2, 1), jnp.float32)),
        compiler_params=cparams_acc,
    )(x3, w1, b1, w2, b2)

    # Fold BatchNorm (training-mode biased batch stats) into scale/shift.
    cnt = jnp.float32(n * hw)
    mean = ch_sum / cnt
    var = ch_sq / cnt - mean * mean
    scale = gamma * lax.rsqrt(var + 1e-5)                        # (2*ndf, 1)
    shift = beta - mean * scale                                  # (2*ndf, 1)

    # ---- Pass 2: apply folded BN + LeakyReLU + conv3, lane-dense output ----
    out = pl.pallas_call(
        _apply_kernel,
        grid=grid,
        in_specs=[x_spec, full(w1.shape), full(b1.shape),
                  full(w2.shape), full(b2.shape),
                  full(scale.shape), full(shift.shape),
                  full(w3.shape), full(b3.shape)],
        out_specs=pl.BlockSpec((None, 1, tp), lambda b, t: (b, 0, t)),
        out_shape=jax.ShapeDtypeStruct((n, 1, hw_pad), jnp.float32),
        compiler_params=cparams_par,
    )(x3, w1, b1, w2, b2, scale, shift, w3, b3)

    # (N, 1, HW_pad) -> (N, 1, H, W): slice off padding, pure reshape.
    return out[:, :, :hw].reshape(n, 1, h, w)


def init_params(key, input_nc, ndf=64):
    """Deterministic init matching PyTorch Conv2d default (kaiming-uniform-ish)
    and BatchNorm2d default (gamma=1, beta=0). Weights stored as (Cout, Cin),
    biases / BN params as (Cout, 1) to broadcast over the pixel (lane) axis."""
    def conv_init(k, cin, cout):
        kw, kb = jax.random.split(k)
        bound = 1.0 / jnp.sqrt(float(cin))  # fan_in = cin * 1 * 1
        wt = jax.random.uniform(kw, (cout, cin), jnp.float32, -bound, bound)
        bs = jax.random.uniform(kb, (cout, 1), jnp.float32, -bound, bound)
        return wt, bs

    k1, k2, k3 = jax.random.split(key, 3)
    w1, b1 = conv_init(k1, input_nc, ndf)
    w2, b2 = conv_init(k2, ndf, ndf * 2)
    w3, b3 = conv_init(k3, ndf * 2, 1)
    gamma = jnp.ones((ndf * 2, 1), jnp.float32)
    beta = jnp.zeros((ndf * 2, 1), jnp.float32)
    return (w1, b1, w2, b2, gamma, beta, w3, b3)


if __name__ == "__main__":
    key = jax.random.PRNGKey(0)
    k_x, k_p = jax.random.split(key)

    N, C, H, W = 2, 4, 16, 16
    NDF = 64
    x = jax.random.normal(k_x, (N, C, H, W), jnp.float32)
    params = init_params(k_p, input_nc=C, ndf=NDF)

    y = pixel_discriminator(x, params)
    jax.block_until_ready(y)
    assert y.shape == (N, 1, H, W), y.shape
    print("KERNEL_OK")
</pallas_src>

<mosaic_0001>
module attributes {stable_mosaic.version = 11 : i64} {
  func.func @_stats_kernel(%arg0: i32, %arg1: i32, %arg2: memref<1x4x256xf32, #tpu.memory_space<vmem>>, %arg3: memref<64x4xf32, #tpu.memory_space<vmem>>, %arg4: memref<64x1xf32, #tpu.memory_space<vmem>>, %arg5: memref<128x64xf32, #tpu.memory_space<vmem>>, %arg6: memref<128x1xf32, #tpu.memory_space<vmem>>, %arg7: memref<128x1xf32, #tpu.memory_space<vmem>>, %arg8: memref<128x1xf32, #tpu.memory_space<vmem>>) attributes {dimension_semantics = [#tpu.dimension_semantics<arbitrary>, #tpu.dimension_semantics<arbitrary>], iteration_bounds = array<i64: 2, 1>, scalar_prefetch = 0 : i64, scratch_operands = 0 : i64, tpu.core_type = #tpu.core_type<tc>, window_params = [{transform_indices = @transform_0, window_bounds = array<i64: 1, 4, 256>}, {pipeline_mode = #tpu.pipeline_mode<synchronous>, transform_indices = @transform_1, window_bounds = array<i64: 64, 4>}, {pipeline_mode = #tpu.pipeline_mode<synchronous>, transform_indices = @transform_2, window_bounds = array<i64: 64, 1>}, {pipeline_mode = #tpu.pipeline_mode<synchronous>, transform_indices = @transform_3, window_bounds = array<i64: 128, 64>}, {pipeline_mode = #tpu.pipeline_mode<synchronous>, transform_indices = @transform_4, window_bounds = array<i64: 128, 1>}, {pipeline_mode = #tpu.pipeline_mode<synchronous>, transform_indices = @transform_5, window_bounds = array<i64: 128, 1>}, {pipeline_mode = #tpu.pipeline_mode<synchronous>, transform_indices = @transform_6, window_bounds = array<i64: 128, 1>}]} {
    %c0_i32 = arith.constant 0 : i32
    %0 = arith.cmpi eq, %arg0, %c0_i32 : i32
    %c0_i32_0 = arith.constant 0 : i32
    %1 = arith.cmpi eq, %arg1, %c0_i32_0 : i32
    %2 = arith.andi %0, %1 : i1
    %3 = arith.extui %2 : i1 to i32
    %c0_i32_1 = arith.constant 0 : i32
    %4 = arith.cmpi ne, %3, %c0_i32_1 : i32
    scf.if %4 {
      %cst_25 = arith.constant 0.000000e+00 : f32
      %33 = vector.broadcast %cst_25 : f32 to vector<128x1xf32>
      %c0_26 = arith.constant 0 : index
      %c0_27 = arith.constant 0 : index
      %34 = vector.load %arg7[%c0_26, %c0_27] : memref<128x1xf32, #tpu.memory_space<vmem>>, vector<128x1xf32>
      tpu.vector_store %arg7[%c0_26, %c0_27], %33 {strides = array<i32>} : memref<128x1xf32, #tpu.memory_space<vmem>>, vector<128x1xf32>,
      %cst_28 = arith.constant 0.000000e+00 : f32
      %35 = vector.broadcast %cst_28 : f32 to vector<128x1xf32>
      %c0_29 = arith.constant 0 : index
      %c0_30 = arith.constant 0 : index
      %36 = vector.load %arg8[%c0_29, %c0_30] : memref<128x1xf32, #tpu.memory_space<vmem>>, vector<128x1xf32>
      tpu.vector_store %arg8[%c0_29, %c0_30], %35 {strides = array<i32>} : memref<128x1xf32, #tpu.memory_space<vmem>>, vector<128x1xf32>,
    } else {
    }
    %c0 = arith.constant 0 : index
    %c0_2 = arith.constant 0 : index
    %c0_3 = arith.constant 0 : index
    %5 = vector.load %arg2[%c0, %c0_2, %c0_3] : memref<1x4x256xf32, #tpu.memory_space<vmem>>, vector<1x4x256xf32>
    %6 = vector.shape_cast %5 : vector<1x4x256xf32> to vector<4x256xf32>
    %c0_4 = arith.constant 0 : index
    %c0_5 = arith.constant 0 : index
    %7 = vector.load %arg3[%c0_4, %c0_5] : memref<64x4xf32, #tpu.memory_space<vmem>>, vector<64x4xf32>
    %cst = arith.constant dense<0.000000e+00> : vector<64x256xf32>
    %8 = tpu.matmul %7, %6, %cst {dimension_numbers = #tpu.dot_dimension_numbers<[1], [0], [0], [1], [0, 0, 1, 1], [], []>} : vector<64x4xf32>, vector<4x256xf32>, vector<64x256xf32> -> vector<64x256xf32>
    %c0_6 = arith.constant 0 : index
    %c0_7 = arith.constant 0 : index
    %9 = vector.load %arg4[%c0_6, %c0_7] : memref<64x1xf32, #tpu.memory_space<vmem>>, vector<64x1xf32>
    %10 = vector.broadcast %9 : vector<64x1xf32> to vector<64x256xf32>
    %11 = arith.addf %8, %10 : vector<64x256xf32>
    %cst_8 = arith.constant 0.000000e+00 : f32
    %12 = vector.broadcast %cst_8 : f32 to vector<64x256xf32>
    %13 = arith.cmpf oge, %11, %12 : vector<64x256xf32>
    %cst_9 = arith.constant 2.000000e-01 : f32
    %14 = vector.broadcast %cst_9 : f32 to vector<64x256xf32>
    %15 = arith.mulf %14, %11 : vector<64x256xf32>
    %16 = arith.select %13, %11, %15 : vector<64x256xi1>, vector<64x256xf32>
    %c0_10 = arith.constant 0 : index
    %c0_11 = arith.constant 0 : index
    %17 = vector.load %arg5[%c0_10, %c0_11] : memref<128x64xf32, #tpu.memory_space<vmem>>, vector<128x64xf32>
    %cst_12 = arith.constant dense<0.000000e+00> : vector<128x256xf32>
    %18 = tpu.matmul %17, %16, %cst_12 {dimension_numbers = #tpu.dot_dimension_numbers<[1], [0], [0], [1], [0, 0, 1, 1], [], []>} : vector<128x64xf32>, vector<64x256xf32>, vector<128x256xf32> -> vector<128x256xf32>
    %c0_13 = arith.constant 0 : index
    %c0_14 = arith.constant 0 : index
    %19 = vector.load %arg6[%c0_13, %c0_14] : memref<128x1xf32, #tpu.memory_space<vmem>>, vector<128x1xf32>
    %20 = vector.broadcast %19 : vector<128x1xf32> to vector<128x256xf32>
    %21 = arith.addf %18, %20 : vector<128x256xf32>
    %c0_15 = arith.constant 0 : index
    %c0_16 = arith.constant 0 : index
    %22 = vector.load %arg7[%c0_15, %c0_16] : memref<128x1xf32, #tpu.memory_space<vmem>>, vector<128x1xf32>
    %cst_17 = arith.constant dense<0.000000e+00> : vector<128xf32>
    %23 = vector.multi_reduction <add>, %21, %cst_17 [1] : vector<128x256xf32> to vector<128xf32>
    %24 = vector.shape_cast %23 : vector<128xf32> to vector<128x1xf32>
    %25 = arith.addf %22, %24 : vector<128x1xf32>
    %c0_18 = arith.constant 0 : index
    %c0_19 = arith.constant 0 : index
    %26 = vector.load %arg7[%c0_18, %c0_19] : memref<128x1xf32, #tpu.memory_space<vmem>>, vector<128x1xf32>
    tpu.vector_store %arg7[%c0_18, %c0_19], %25 {strides = array<i32>} : memref<128x1xf32, #tpu.memory_space<vmem>>, vector<128x1xf32>,
    %c0_20 = arith.constant 0 : index
    %c0_21 = arith.constant 0 : index
    %27 = vector.load %arg8[%c0_20, %c0_21] : memref<128x1xf32, #tpu.memory_space<vmem>>, vector<128x1xf32>
    %28 = arith.mulf %21, %21 : vector<128x256xf32>
    %cst_22 = arith.constant dense<0.000000e+00> : vector<128xf32>
    %29 = vector.multi_reduction <add>, %28, %cst_22 [1] : vector<128x256xf32> to vector<128xf32>
    %30 = vector.shape_cast %29 : vector<128xf32> to vector<128x1xf32>
    %31 = arith.addf %27, %30 : vector<128x1xf32>
    %c0_23 = arith.constant 0 : index
    %c0_24 = arith.constant 0 : index
    %32 = vector.load %arg8[%c0_23, %c0_24] : memref<128x1xf32, #tpu.memory_space<vmem>>, vector<128x1xf32>
    tpu.vector_store %arg8[%c0_23, %c0_24], %31 {strides = array<i32>} : memref<128x1xf32, #tpu.memory_space<vmem>>, vector<128x1xf32>,
    return
  }
  func.func @transform_0(%arg0: i32, %arg1: i32) -> (i32, i32, i32) {
    %c0_i32 = arith.constant 0 : i32
    %c0_i32_0 = arith.constant 0 : i32
    return %arg0, %c0_i32, %arg1 : i32, i32, i32
  }
  func.func @transform_1(%arg0: i32, %arg1: i32) -> (i32, i32) {
    %c0_i32 = arith.constant 0 : i32
    %c0_i32_0 = arith.constant 0 : i32
    %c0_i32_1 = arith.constant 0 : i32
    return %c0_i32, %c0_i32_0 : i32, i32
  }
  func.func @transform_2(%arg0: i32, %arg1: i32) -> (i32, i32) {
    %c0_i32 = arith.constant 0 : i32
    %c0_i32_0 = arith.constant 0 : i32
    %c0_i32_1 = arith.constant 0 : i32
    return %c0_i32, %c0_i32_0 : i32, i32
  }
  func.func @transform_3(%arg0: i32, %arg1: i32) -> (i32, i32) {
    %c0_i32 = arith.constant 0 : i32
    %c0_i32_0 = arith.constant 0 : i32
    %c0_i32_1 = arith.constant 0 : i32
    return %c0_i32, %c0_i32_0 : i32, i32
  }
  func.func @transform_4(%arg0: i32, %arg1: i32) -> (i32, i32) {
    %c0_i32 = arith.constant 0 : i32
    %c0_i32_0 = arith.constant 0 : i32
    %c0_i32_1 = arith.constant 0 : i32
    return %c0_i32, %c0_i32_0 : i32, i32
  }
  func.func @transform_5(%arg0: i32, %arg1: i32) -> (i32, i32) {
    %c0_i32 = arith.constant 0 : i32
    %c0_i32_0 = arith.constant 0 : i32
    %c0_i32_1 = arith.constant 0 : i32
    return %c0_i32, %c0_i32_0 : i32, i32
  }
  func.func @transform_6(%arg0: i32, %arg1: i32) -> (i32, i32) {
    %c0_i32 = arith.constant 0 : i32
    %c0_i32_0 = arith.constant 0 : i32
    %c0_i32_1 = arith.constant 0 : i32
    return %c0_i32, %c0_i32_0 : i32, i32
  }
}

</mosaic_0001>

<bundles_post_ra>
// kernel: tpu_custom_call.1
= control target key start
LH: loop header
LB: loop body
LE: loop exit
PB: predicated region body
PF: predicated region fallthrough
CT: control target
= control target key end

     0   :  { %s1254_s21 = smov 0   ;;  %s1256_s22 = smov 0   ;;  %s1847_s0 = inlined_call_operand.vmem [shape: f32[2,4,256], index: 0, kind: input, shape index: {}]   ;;  %s1848_s1 = inlined_call_operand.vmem [shape: f32[64,4], index: 1, kind: input, shape index: {}]   ;;  %s1849_s2 = inlined_call_operand.vmem [shape: f32[64,1], index: 2, kind: input, shape index: {}]   ;;  %s1850_s3 = inlined_call_operand.vmem [shape: f32[128,64], index: 3, kind: input, shape index: {}]   ;;  %s1851_s4 = inlined_call_operand.vmem [shape: f32[128,1], index: 4, kind: input, shape index: {}]   ;;  %s1852_s5 = inlined_call_operand.vmem [shape: f32[128,1], index: 5, kind: output, shape index: {0}]   ;;  %s1853_s6 = inlined_call_operand.vmem [shape: f32[128,1], index: 6, kind: output, shape index: {1}]  }
   0x1   :  { %s1258_s23 = smov 0  }
   0x2 LB: > { %s29_s24 = sadd.s32 1, %s1211_s22  ;;  %p1090_p0 = scmp.ge.s32.totalorder %s1215_s23, 1  ;;  %s1215_s23 = sphi %s1258_s23, %s17_s23   ;;  %s1211_s22 = sphi %s1256_s22, %s1855_s22   ;;  %s1207_s21 = sphi %s1254_s21, %s1854_s21  }
   0x3   : > { %p31_p1 = scmp.ge.s32.totalorder %s29_s24, 2  ;;  %p224_p2 = scmp.lt.s32.totalorder %s1215_s23, 3 }
   0x5   : > { %s1857_s24 = smov (%p31_p1, %s29_s24), 0  ;;  %p225_p3 = pnand %p1090_p0, %p224_p2 }
   0x6   : > { %p254_p4 = scmp.lt.s32.totalorder (!%p225_p3), %s1207_s21, 1  ;;  %p263_p5 = scmp.eq.s32.totalorder (!%p225_p3), %s1207_s21, 0 }
   0x7   : > { %228 = sbr.rel (%p225_p3) target bundleno = 610 (0x262), region = 40 }
   0xc   : > { %s1859_s21 = smov (!%p254_p4, %s1207_s21), 1  ;;  %268 = sbr.rel (!%p263_p5) target bundleno = 45 (0x2d), region = 44  ;;  %vm269_vm0 = vcmask (%p263_p5), 7168   ;;  %v1217_v0 = vmov (%p263_p5), 0.0  }
   0xd   : > { %s1146_s25 = sshll.u32 %s1859_s21, 3  ;;  %270 = vst.msk [vmem:[%s1852_s5] sm:$0xff] (%p263_p5), %vm269_vm0, %v1217_v0 }
   0xe   : > { %s1275_s28 = scalar_lea.vmem %s1847_s0, %s1146_s25  ;;  %271 = vst.msk [vmem:[%s1852_s5 + $0x8] sm:$0xff] (%p263_p5), %vm269_vm0, %v1217_v0 }
   0xf   : > { %272 = vst.msk [vmem:[%s1852_s5 + $0x10] sm:$0xff] (%p263_p5), %vm269_vm0, %v1217_v0 }
  0x10   : > { %273 = vst.msk [vmem:[%s1852_s5 + $0x18] sm:$0xff] (%p263_p5), %vm269_vm0, %v1217_v0 }
  0x11   : > { %274 = vst.msk [vmem:[%s1852_s5 + $0x20] sm:$0xff] %vm269_vm0, %v1217_v0 }
  0x12   : > { %275 = vst.msk [vmem:[%s1852_s5 + $0x28] sm:$0xff] %vm269_vm0, %v1217_v0 }
  0x13   : > { %276 = vst.msk [vmem:[%s1852_s5 + $0x30] sm:$0xff] %vm269_vm0, %v1217_v0 }
  0x14   : > { %277 = vst.msk [vmem:[%s1852_s5 + $0x38] sm:$0xff] %vm269_vm0, %v1217_v0 }
  0x15   : > { %278 = vst.msk [vmem:[%s1852_s5 + $0x40] sm:$0xff] %vm269_vm0, %v1217_v0 }
  0x16   : > { %279 = vst.msk [vmem:[%s1852_s5 + $0x48] sm:$0xff] %vm269_vm0, %v1217_v0 }
  0x17   : > { %280 = vst.msk [vmem:[%s1852_s5 + $0x50] sm:$0xff] %vm269_vm0, %v1217_v0 }
  0x18   : > { %281 = vst.msk [vmem:[%s1852_s5 + $0x58] sm:$0xff] %vm269_vm0, %v1217_v0 }
  0x19   : > { %282 = vst.msk [vmem:[%s1852_s5 + $0x60] sm:$0xff] %vm269_vm0, %v1217_v0 }
  0x1a   : > { %283 = vst.msk [vmem:[%s1852_s5 + $0x68] sm:$0xff] %vm269_vm0, %v1217_v0 }
  0x1b   : > { %284 = vst.msk [vmem:[%s1852_s5 + $0x70] sm:$0xff] %vm269_vm0, %v1217_v0 }
  0x1c   : > { %285 = vst.msk [vmem:[%s1852_s5 + $0x78] sm:$0xff] %vm269_vm0, %v1217_v0 }
  0x1d   : > { %286 = vst.msk [vmem:[%s1853_s6] sm:$0xff] %vm269_vm0, %v1217_v0 }
  0x1e   : > { %287 = vst.msk [vmem:[%s1853_s6 + $0x8] sm:$0xff] %vm269_vm0, %v1217_v0 }
  0x1f   : > { %288 = vst.msk [vmem:[%s1853_s6 + $0x10] sm:$0xff] %vm269_vm0, %v1217_v0 }
  0x20   : > { %289 = vst.msk [vmem:[%s1853_s6 + $0x18] sm:$0xff] %vm269_vm0, %v1217_v0 }
  0x21   : > { %290 = vst.msk [vmem:[%s1853_s6 + $0x20] sm:$0xff] %vm269_vm0, %v1217_v0 }
  0x22   : > { %291 = vst.msk [vmem:[%s1853_s6 + $0x28] sm:$0xff] %vm269_vm0, %v1217_v0 }
  0x23   : > { %292 = vst.msk [vmem:[%s1853_s6 + $0x30] sm:$0xff] %vm269_vm0, %v1217_v0 }
  0x24   : > { %293 = vst.msk [vmem:[%s1853_s6 + $0x38] sm:$0xff] %vm269_vm0, %v1217_v0 }
  0x25   : > { %294 = vst.msk [vmem:[%s1853_s6 + $0x40] sm:$0xff] %vm269_vm0, %v1217_v0 }
  0x26   : > { %295 = vst.msk [vmem:[%s1853_s6 + $0x48] sm:$0xff] %vm269_vm0, %v1217_v0 }
  0x27   : > { %296 = vst.msk [vmem:[%s1853_s6 + $0x50] sm:$0xff] %vm269_vm0, %v1217_v0 }
  0x28   : > { %297 = vst.msk [vmem:[%s1853_s6 + $0x58] sm:$0xff] %vm269_vm0, %v1217_v0 }
  0x29   : > { %298 = vst.msk [vmem:[%s1853_s6 + $0x60] sm:$0xff] %vm269_vm0, %v1217_v0 }
  0x2a   : > { %299 = vst.msk [vmem:[%s1853_s6 + $0x68] sm:$0xff] %vm269_vm0, %v1217_v0 }
  0x2b   : > { %300 = vst.msk [vmem:[%s1853_s6 + $0x70] sm:$0xff] %vm269_vm0, %v1217_v0 }
  0x2c   : > { %301 = vst.msk [vmem:[%s1853_s6 + $0x78] sm:$0xff] %vm269_vm0, %v1217_v0 }
  0x2d PF: > { %v316_v1 = vld [vmem:[%s1849_s2 + $0x28] sm:$0xff]  ;;  %v302_v2 = vld [vmem:[%s1275_s28] sm:$0xff]  ;;  %v1218_v3 = vmov 0   ;;  %v318_v4 = vld [vmem:[%s1849_s2 + $0x38] sm:$0xff]  ;;  %vm388_vm1 = vcmask 1043456   ;;  %vm363_vm2 = vcmask 31744  }
  0x2e   : > { %1191 = vset.pattern.permute.xlu1 %v1218_v3  ;;  %360 = vst [vmem:[#allocation1] ss:$2 sm:$0xff] %v302_v2  ;;  %1190 = vset.pattern.permute.xlu0 %v1218_v3  ;;  %v303_v5 = vld [vmem:[%s1848_s1] sm:$0xff]  ;;  %v317_v7 = vld [vmem:[%s1849_s2 + $0x30] sm:$0xff]  ;;  %v314_v10 = vld [vmem:[%s1849_s2 + $0x18] sm:$0xff] }
  0x2f   : > { %346 = vperm.xlu1 %1191, %v316_v1   ;;  %356 = vperm.xlu0 %1190, %v318_v4   ;;  %v315_v6 = vld [vmem:[%s1849_s2 + $0x20] sm:$0xff]  ;;  %v304_v11 = vld [vmem:[%s1848_s1 + $0x8] sm:$0xff]  ;;  %v313_v14 = vld [vmem:[%s1849_s2 + $0x10] sm:$0xff] }
  0x30   : > { %1192 = vset.pattern.permute.xlu2 %v1218_v3  ;;  %v311_v12 = vld [vmem:[%s1849_s2] sm:$0xff]  ;;  %v312_v13 = vld [vmem:[%s1849_s2 + $0x8] sm:$0xff]  ;;  %v305_v15 = vld [vmem:[%s1848_s1 + $0x10] sm:$0xff] }
  0x31   : > { %336 = vperm.xlu2 %1192, %v314_v10   ;;  %v540_v16 = vld [vmem:[%s1851_s4 + $0x8] sm:$0xff]  ;;  %v541_v17 = vld [vmem:[%s1851_s4 + $0x10] sm:$0xff]  ;;  %v539_v18 = vld [vmem:[%s1851_s4] sm:$0xff] }
  0x32   : > { %v306_v19 = vld [vmem:[%s1848_s1 + $0x18] sm:$0xff]  ;;  %v543_v20 = vld [vmem:[%s1851_s4 + $0x20] sm:$0xff]  ;;  %v544_v21 = vld [vmem:[%s1851_s4 + $0x28] sm:$0xff] }
  0x33   : > { %v542_v22 = vld [vmem:[%s1851_s4 + $0x18] sm:$0xff]  ;;  %v307_v23 = vld [vmem:[%s1848_s1 + $0x20] sm:$0xff]  ;;  %v545_v26 = vld [vmem:[%s1851_s4 + $0x30] sm:$0xff] }
  0x34   : > { %v546_v24 = vld [vmem:[%s1851_s4 + $0x38] sm:$0xff]  ;;  %v547_v25 = vld [vmem:[%s1851_s4 + $0x40] sm:$0xff]  ;;  %v308_v27 = vld [vmem:[%s1848_s1 + $0x28] sm:$0xff] }
  0x35   : > { %v361_v8 = vld.sshfl [vmem:[#allocation1] sm:$0xff pattern:$0x75316420]  ;;  %v362_v9 = vld.sshfl [vmem:[#allocation1 + $0x8] sm:$0xff pattern:$0x75316420] }
  0x36   : > { %1094 = vmatpush.msk.msra.mxu0 %vm388_vm1, %v361_v8  ;;  %1103 = vmatpush.msk.msra.mxu1 %vm388_vm1, %v362_v9  ;;  %v549_v28 = vld [vmem:[%s1851_s4 + $0x50] sm:$0xff]  ;;  %v550_v29 = vld [vmem:[%s1851_s4 + $0x58] sm:$0xff]  ;;  %v548_v30 = vld [vmem:[%s1851_s4 + $0x48] sm:$0xff] }
  0x37   : > { %1095 = vmatmul.msk.f32.vlgmr.msra.gmra.mxu0 %vm363_vm2, %v303_v5  ;;  %1104 = vmatmul.msk.f32.vlgmr.msra.gmra.mxu1 %vm363_vm2, %v303_v5  ;;  %v309_v31 = vld [vmem:[%s1848_s1 + $0x30] sm:$0xff]  ;;  %v552_v32 = vld [vmem:[%s1851_s4 + $0x68] sm:$0xff]  ;;  %v551_v34 = vld [vmem:[%s1851_s4 + $0x60] sm:$0xff] }
  0x38   : > { %341 = vperm.xlu1 %1191, %v315_v6   ;;  %351 = vperm.xlu0 %1190, %v317_v7   ;;  %v553_v33 = vld [vmem:[%s1851_s4 + $0x70] sm:$0xff]  ;;  %v310_v35 = vld [vmem:[%s1848_s1 + $0x38] sm:$0xff] }
  0x39   : > { %331 = vperm.xlu2 %1192, %v313_v14   ;;  %v554_v36 = vld [vmem:[%s1851_s4 + $0x78] sm:$0xff] }
  0x3f   : > { %1096 = vmatmul.msk.f32.gmra.mxu0 %vm363_vm2, %v304_v11  ;;  %1105 = vmatmul.msk.f32.gmra.mxu1 %vm363_vm2, %v304_v11 }
  0x40   : > { %321 = vperm.xlu1 %1191, %v311_v12   ;;  %326 = vperm.xlu0 %1190, %v312_v13  }
  0x41   : > { %557 = vperm.xlu2 %1192, %v539_v18  }
  0x47   : > { %1097 = vmatmul.msk.f32.gmra.mxu0 %vm363_vm2, %v305_v15  ;;  %1106 = vmatmul.msk.f32.gmra.mxu1 %vm363_vm2, %v305_v15 }
  0x48   : > { %562 = vperm.xlu0 %1190, %v540_v16   ;;  %567 = vperm.xlu1 %1191, %v541_v17  }
  0x49   : > { %572 = vperm.xlu2 %1192, %v542_v22  }
  0x4f   : > { %1098 = vmatmul.msk.f32.gmra.mxu0 %vm363_vm2, %v306_v19  ;;  %1107 = vmatmul.msk.f32.gmra.mxu1 %vm363_vm2, %v306_v19 }
  0x50   : > { %577 = vperm.xlu0 %1190, %v543_v20   ;;  %582 = vperm.xlu1 %1191, %v544_v21  }
  0x51   : > { %587 = vperm.xlu2 %1192, %v545_v26  }
  0x57   : > { %1099 = vmatmul.msk.f32.gmra.mxu0 %vm363_vm2, %v307_v23  ;;  %1108 = vmatmul.msk.f32.gmra.mxu1 %vm363_vm2, %v307_v23 }
  0x58   : > { %592 = vperm.xlu0 %1190, %v546_v24   ;;  %597 = vperm.xlu1 %1191, %v547_v25  }
  0x59   : > { %602 = vperm.xlu2 %1192, %v548_v30  }
  0x5f   : > { %1100 = vmatmul.msk.f32.gmra.mxu0 %vm363_vm2, %v308_v27  ;;  %1109 = vmatmul.msk.f32.gmra.mxu1 %vm363_vm2, %v308_v27 }
  0x60   : > { %607 = vperm.xlu0 %1190, %v549_v28   ;;  %612 = vperm.xlu1 %1191, %v550_v29  }
  0x61   : > { %617 = vperm.xlu2 %1192, %v551_v34  }
  0x67   : > { %1101 = vmatmul.msk.f32.gmra.mxu0 %vm363_vm2, %v309_v31  ;;  %1110 = vmatmul.msk.f32.gmra.mxu1 %vm363_vm2, %v309_v31 }
  0x68   : > { %622 = vperm.xlu0 %1190, %v552_v32   ;;  %627 = vperm.xlu1 %1191, %v553_v33  }
  0x69   : > { %632 = vperm.xlu2 %1192, %v554_v36  }
  0x6f   : > { %1102 = vmatmul.msk.f32.gmra.mxu0 %vm363_vm2, %v310_v35  ;;  %1111 = vmatmul.msk.f32.gmra.mxu1 %vm363_vm2, %v310_v35 }
  0x8b   : > { %v337_v54 = vpop.permute.xlu2 %336 }
  0x93   : > { %v332_v11 = vpop.permute.xlu2 %331 }
  0xa1   : > { %v357_v49 = vpop.permute.xlu0 %356  ;;  %v347_v50 = vpop.permute.xlu1 %346 }
  0xaa   : > { %v352_v53 = vpop.permute.xlu0 %351  ;;  %v342_v55 = vpop.permute.xlu1 %341 }
  0xb2   : > { %v327_v10 = vpop.permute.xlu0 %326  ;;  %v322_v17 = vpop.permute.xlu1 %321 }
  0xb4   : > { %v1518_v37 = vpop.f32.mrf.mxu0  ;;  %v1520_v38 = vpop.f32.mrf.mxu1 }
  0xb5   : > { %v411_v27 = vadd.f32 %v1518_v37, %v322_v17  ;;  %v452_v30 = vadd.f32 %v1520_v38, %v322_v17 }
  0xb7   : > { %v491_v38 = vmul.f32 0.2, %v411_v27  ;;  %vm475_vm1 = vcmp.ge.f32.partialorder %v411_v27, 0.0  ;;  %vm476_vm2 = vcmp.ge.f32.partialorder %v452_v30, 0.0 }
  0xbc   : > { %v413_v39 = vpop.f32.mrf.mxu0  ;;  %v1522_v40 = vpop.f32.mrf.mxu1 }
  0xbd   : > { %v414_v21 = vadd.f32 %v413_v39, %v327_v10  ;;  %v455_v24 = vadd.f32 %v1522_v40, %v327_v10  ;;  %v492_v40 = vmul.f32 0.2, %v452_v30 }
  0xbf   : > { %v493_v34 = vmul.f32 0.2, %v414_v21  ;;  %vm477_vm15 = vcmp.ge.f32.partialorder %v414_v21, 0.0  ;;  %v494_v36 = vmul.f32 0.2, %v455_v24  ;;  %vm478_vm0 = vcmp.ge.f32.partialorder %v455_v24, 0.0 }
  0xc4   : > { %v416_v41 = vpop.f32.mrf.mxu0  ;;  %v457_v42 = vpop.f32.mrf.mxu1 }
  0xc5   : > { %v417_v14 = vadd.f32 %v416_v41, %v332_v11  ;;  %v458_v18 = vadd.f32 %v457_v42, %v332_v11  ;;  %v509_v41 = vsel %vm477_vm15, %v414_v21, %v493_v34  ;;  %v510_v42 = vsel %vm478_vm0, %v455_v24, %v494_v36 }
  0xc7   : > { %v495_v29 = vmul.f32 0.2, %v417_v14  ;;  %vm479_vm13 = vcmp.ge.f32.partialorder %v417_v14, 0.0  ;;  %v496_v32 = vmul.f32 0.2, %v458_v18  ;;  %vm480_vm14 = vcmp.ge.f32.partialorder %v458_v18, 0.0 }
  0xc9   : > { %v511_v37 = vsel %vm479_vm13, %v417_v14, %v495_v29  ;;  %v512_v39 = vsel %vm480_vm14, %v458_v18, %v496_v32 }
  0xcc   : > { %v419_v43 = vpop.f32.mrf.mxu0  ;;  %v460_v44 = vpop.f32.mrf.mxu1 }
  0xcd   : > { %v420_v4 = vadd.f32 %v419_v43, %v337_v54  ;;  %v461_v12 = vadd.f32 %v460_v44, %v337_v54  ;;  %v507_v43 = vsel %vm475_vm1, %v411_v27, %v491_v38  ;;  %v523_v44 = vld [vmem:[%s1850_s3] sm:$0xff]  ;;  %v532_v54 = vld [vmem:[%s1850_s3 + $0x48] sm:$0xff] }
  0xcf   : > { %v497_v23 = vmul.f32 0.2, %v420_v4  ;;  %vm481_vm11 = vcmp.ge.f32.partialorder %v420_v4, 0.0  ;;  %v498_v26 = vmul.f32 0.2, %v461_v12  ;;  %vm482_vm12 = vcmp.ge.f32.partialorder %v461_v12, 0.0 }
  0xd1   : > { %v513_v33 = vsel %vm481_vm11, %v420_v4, %v497_v23  ;;  %v514_v35 = vsel %vm482_vm12, %v461_v12, %v498_v26 }
  0xd4   : > { %v422_v45 = vpop.f32.mrf.mxu0  ;;  %v463_v46 = vpop.f32.mrf.mxu1 }
  0xd5   : > { %v423_v63 = vadd.f32 %v422_v45, %v342_v55  ;;  %v464_v5 = vadd.f32 %v463_v46, %v342_v55  ;;  %v527_v45 = vld [vmem:[%s1850_s3 + $0x20] sm:$0xff]  ;;  %v508_v46 = vsel %vm476_vm2, %v452_v30, %v492_v40  ;;  %v533_v55 = vld [vmem:[%s1850_s3 + $0x50] sm:$0xff] }
  0xd7   : > { %v499_v16 = vmul.f32 0.2, %v423_v63  ;;  %vm483_vm9 = vcmp.ge.f32.partialorder %v423_v63, 0.0  ;;  %v500_v20 = vmul.f32 0.2, %v464_v5  ;;  %vm484_vm10 = vcmp.ge.f32.partialorder %v464_v5, 0.0 }
  0xd9   : > { %v515_v28 = vsel %vm483_vm9, %v423_v63, %v499_v16  ;;  %v516_v31 = vsel %vm484_vm10, %v464_v5, %v500_v20  ;;  %v563_v63 = vpop.permute.xlu0 %562 }
  0xdc   : > { %v425_v47 = vpop.f32.mrf.mxu0  ;;  %v466_v48 = vpop.f32.mrf.mxu1 }
  0xdd   : > { %v426_v60 = vadd.f32 %v425_v47, %v347_v50  ;;  %v467_v0 = vadd.f32 %v466_v48, %v347_v50  ;;  %v524_v47 = vld [vmem:[%s1850_s3 + $0x8] sm:$0xff]  ;;  %v529_v50 = vld [vmem:[%s1850_s3 + $0x30] sm:$0xff] }
  0xde   : > { %v528_v48 = vld [vmem:[%s1850_s3 + $0x28] sm:$0xff] }
  0xdf   : > { %v501_v9 = vmul.f32 0.2, %v426_v60  ;;  %vm485_vm7 = vcmp.ge.f32.partialorder %v426_v60, 0.0  ;;  %v502_v13 = vmul.f32 0.2, %v467_v0  ;;  %vm486_vm8 = vcmp.ge.f32.partialorder %v467_v0, 0.0 }
  0xe1   : > { %v517_v22 = vsel %vm485_vm7, %v426_v60, %v501_v9  ;;  %v518_v25 = vsel %vm486_vm8, %v467_v0, %v502_v13  ;;  %v538_v60 = vld [vmem:[%s1850_s3 + $0x78] sm:$0xff]  ;;  %v568_v9 = vpop.permute.xlu1 %567  ;;  %v578_v13 = vpop.permute.xlu0 %577 }
  0xe4   : > { %v428_v51 = vpop.f32.mrf.mxu0  ;;  %v469_v52 = vpop.f32.mrf.mxu1 }
  0xe5   : > { %v429_v56 = vadd.f32 %v428_v51, %v352_v53  ;;  %v470_v57 = vadd.f32 %v469_v52, %v352_v53  ;;  %v526_v51 = vld [vmem:[%s1850_s3 + $0x18] sm:$0xff]  ;;  %v531_v53 = vld [vmem:[%s1850_s3 + $0x40] sm:$0xff] }
  0xe6   : > { %v530_v52 = vld [vmem:[%s1850_s3 + $0x38] sm:$0xff] }
  0xe7   : > { %v503_v1 = vmul.f32 0.2, %v429_v56  ;;  %vm487_vm5 = vcmp.ge.f32.partialorder %v429_v56, 0.0  ;;  %v504_v6 = vmul.f32 0.2, %v470_v57  ;;  %vm488_vm6 = vcmp.ge.f32.partialorder %v470_v57, 0.0 }
  0xe9   : > { %v519_v15 = vsel %vm487_vm5, %v429_v56, %v503_v1  ;;  %v520_v19 = vsel %vm488_vm6, %v470_v57, %v504_v6  ;;  %v534_v56 = vld [vmem:[%s1850_s3 + $0x58] sm:$0xff]  ;;  %v535_v57 = vld [vmem:[%s1850_s3 + $0x60] sm:$0xff]  ;;  %v583_v27 = vpop.permute.xlu1 %582 }
  0xec   : > { %v431_v58 = vpop.f32.mrf.mxu0  ;;  %v472_v59 = vpop.f32.mrf.mxu1 }
  0xed   : > { %v432_v61 = vadd.f32 %v431_v58, %v357_v49  ;;  %v473_v62 = vadd.f32 %v472_v59, %v357_v49  ;;  %v525_v49 = vld [vmem:[%s1850_s3 + $0x10] sm:$0xff]  ;;  %v536_v58 = vld [vmem:[%s1850_s3 + $0x68] sm:$0xff] }
  0xee   : > { %v537_v59 = vld [vmem:[%s1850_s3 + $0x70] sm:$0xff] }
  0xef   : > { %vm489_vm3 = vcmp.ge.f32.partialorder %v432_v61, 0.0  ;;  %v505_v2 = vmul.f32 0.2, %v432_v61  ;;  %vm490_vm4 = vcmp.ge.f32.partialorder %v473_v62, 0.0  ;;  %v506_v3 = vmul.f32 0.2, %v473_v62 }
  0xf1   : > { %v521_v7 = vsel %vm489_vm3, %v432_v61, %v505_v2  ;;  %v522_v8 = vsel %vm490_vm4, %v473_v62, %v506_v3  ;;  %vm635_vm3 = vcmask 523264   ;;  %v558_v61 = vpop.permute.xlu2 %557  ;;  %vm894_vm4 = vcmask 7168  }
  0xf2   : > { %692 = vmatpush.msrb.mxu0 %v521_v7  ;;  %1148 = vmatpush.msra.mxu2 %v521_v7 }
  0xf3   : > { %757 = vmatpush.msrb.mxu1 %v522_v8  ;;  %1156 = vmatpush.msra.mxu3 %v522_v8 }
  0xf4   : > { %693 = vmatpush.msrb.mxu0 %v519_v15  ;;  %1149 = vmatpush.msra.mxu2 %v519_v15 }
  0xf5   : > { %758 = vmatpush.msrb.mxu1 %v520_v19  ;;  %1157 = vmatpush.msra.mxu3 %v520_v19 }
  0xf6   : > { %694 = vmatpush.msrb.mxu0 %v517_v22  ;;  %1150 = vmatpush.msra.mxu2 %v517_v22 }
  0xf7   : > { %759 = vmatpush.msrb.mxu1 %v518_v25  ;;  %1158 = vmatpush.msra.mxu3 %v518_v25 }
  0xf8   : > { %695 = vmatpush.msrb.mxu0 %v515_v28  ;;  %1151 = vmatpush.msra.mxu2 %v515_v28 }
  0xf9   : > { %760 = vmatpush.msrb.mxu1 %v516_v31  ;;  %1159 = vmatpush.msra.mxu3 %v516_v31  ;;  %v573_v14 = vpop.permute.xlu2 %572 }
  0xfa   : > { %696 = vmatpush.msrb.mxu0 %v513_v33  ;;  %1152 = vmatpush.msra.mxu2 %v513_v33 }
  0xfb   : > { %761 = vmatpush.msrb.mxu1 %v514_v35  ;;  %1160 = vmatpush.msra.mxu3 %v514_v35 }
  0xfc   : > { %697 = vmatpush.msrb.mxu0 %v511_v37  ;;  %1153 = vmatpush.msra.mxu2 %v511_v37 }
  0xfd   : > { %762 = vmatpush.msrb.mxu1 %v512_v39  ;;  %1161 = vmatpush.msra.mxu3 %v512_v39 }
  0xfe   : > { %698 = vmatpush.msrb.mxu0 %v509_v41  ;;  %1154 = vmatpush.msra.mxu2 %v509_v41 }
  0xff   : > { %763 = vmatpush.msrb.mxu1 %v510_v42  ;;  %1162 = vmatpush.msra.mxu3 %v510_v42 }
 0x100   : > { %699 = vmatpush.msrb.mxu0 %v507_v43  ;;  %1155 = vmatpush.msra.mxu2 %v507_v43 }
 0x101   : > { %764 = vmatpush.msrb.mxu1 %v508_v46  ;;  %1163 = vmatpush.msra.mxu3 %v508_v46  ;;  %v588_v33 = vpop.permute.xlu2 %587 }
 0x102   : > { %1112 = vmatmul.msk.f32.vlgmr.msrb.gmra.mxu0 %vm635_vm3, %v523_v44  ;;  %1116 = vmatmul.msk.f32.vlgmr.msra.gmra.mxu2 %vm635_vm3, %v527_v45 }
 0x103   : > { %1128 = vmatmul.msk.f32.vlgmr.msrb.gmra.mxu1 %vm635_vm3, %v523_v44  ;;  %1132 = vmatmul.msk.f32.vlgmr.msra.gmra.mxu3 %vm635_vm3, %v527_v45 }
 0x10a   : > { %1113 = vmatmul.msk.f32.gmra.mxu0 %vm635_vm3, %v524_v47  ;;  %1117 = vmatmul.msk.f32.gmra.mxu2 %vm635_vm3, %v528_v48 }
 0x10b   : > { %1129 = vmatmul.msk.f32.gmra.mxu1 %vm635_vm3, %v524_v47  ;;  %1133 = vmatmul.msk.f32.gmra.mxu3 %vm635_vm3, %v528_v48 }
 0x112   : > { %1114 = vmatmul.msk.f32.gmra.mxu0 %vm635_vm3, %v525_v49  ;;  %1118 = vmatmul.msk.f32.gmra.mxu2 %vm635_vm3, %v529_v50 }
 0x113   : > { %1130 = vmatmul.msk.f32.gmra.mxu1 %vm635_vm3, %v525_v49  ;;  %1134 = vmatmul.msk.f32.gmra.mxu3 %vm635_vm3, %v529_v50 }
 0x11a   : > { %1115 = vmatmul.msk.f32.gmra.mxu0 %vm635_vm3, %v526_v51  ;;  %1119 = vmatmul.msk.f32.gmra.mxu2 %vm635_vm3, %v530_v52 }
 0x11b   : > { %1131 = vmatmul.msk.f32.gmra.mxu1 %vm635_vm3, %v526_v51  ;;  %1135 = vmatmul.msk.f32.gmra.mxu3 %vm635_vm3, %v530_v52 }
 0x122   : > { %1120 = vmatmul.msk.f32.gmra.mxu2 %vm635_vm3, %v531_v53 }
 0x123   : > { %1136 = vmatmul.msk.f32.gmra.mxu3 %vm635_vm3, %v531_v53 }
 0x12a   : > { %1121 = vmatmul.msk.f32.gmra.mxu2 %vm635_vm3, %v532_v54 }
 0x12b   : > { %1137 = vmatmul.msk.f32.gmra.mxu3 %vm635_vm3, %v532_v54 }
 0x132   : > { %1122 = vmatmul.msk.f32.gmra.mxu2 %vm635_vm3, %v533_v55 }
 0x133   : > { %1138 = vmatmul.msk.f32.gmra.mxu3 %vm635_vm3, %v533_v55 }
 0x13a   : > { %1123 = vmatmul.msk.f32.gmra.mxu2 %vm635_vm3, %v534_v56 }
 0x13b   : > { %1139 = vmatmul.msk.f32.gmra.mxu3 %vm635_vm3, %v534_v56 }
 0x142   : > { %1124 = vmatmul.msk.f32.gmra.mxu2 %vm635_vm3, %v535_v57 }
 0x143   : > { %1140 = vmatmul.msk.f32.gmra.mxu3 %vm635_vm3, %v535_v57  ;;  %v593_v57 = vpop.permute.xlu0 %592 }
 0x14a   : > { %1125 = vmatmul.msk.f32.gmra.mxu2 %vm635_vm3, %v536_v58 }
 0x14b   : > { %1141 = vmatmul.msk.f32.gmra.mxu3 %vm635_vm3, %v536_v58 }
 0x152   : > { %1126 = vmatmul.msk.f32.gmra.mxu2 %vm635_vm3, %v537_v59 }
 0x153   : > { %1142 = vmatmul.msk.f32.gmra.mxu3 %vm635_vm3, %v537_v59 }
 0x15a   : > { %1127 = vmatmul.msk.f32.gmra.mxu2 %vm635_vm3, %v538_v60 }
 0x15b   : > { %1143 = vmatmul.msk.f32.gmra.mxu3 %vm635_vm3, %v538_v60 }
 0x17f   : > { %v701_v62 = vpop.f32.mrf.mxu0 }
 0x180   : > { %v702_v0 = vadd.f32 %v701_v62, %v558_v61  ;;  %v766_v1 = vpop.f32.mrf.mxu1 }
 0x181   : > { %v767_v2 = vadd.f32 %v766_v1, %v558_v61 }
 0x182   : > { %v927_v6 = vmul.f32 %v702_v0, %v702_v0 }
 0x183   : > { %v830_v3 = vadd.f32 %v767_v2, %v702_v0  ;;  %v928_v7 = vmul.f32 %v767_v2, %v767_v2 }
 0x185   : > { %831 = vadd.xlane.f32.xlu0 %v830_v3  ;;  %v713_v4 = vpop.f32.mrf.mxu2  ;;  %v959_v18 = vadd.f32 %v928_v7, %v927_v6  ;;  %v603_v6 = vpop.permute.xlu2 %602 }
 0x186   : > { %v778_v5 = vpop.f32.mrf.mxu3  ;;  %v714_v15 = vadd.f32 %v713_v4, %v578_v13 }
 0x187   : > { %v704_v8 = vpop.f32.mrf.mxu0  ;;  %v779_v16 = vadd.f32 %v778_v5, %v578_v13 }
 0x188   : > { %v705_v10 = vadd.f32 %v704_v8, %v563_v63  ;;  %v769_v11 = vpop.f32.mrf.mxu1  ;;  %v935_v21 = vmul.f32 %v714_v15, %v714_v15  ;;  %v598_v8 = vpop.permute.xlu1 %597 }
 0x189   : > { %v770_v12 = vadd.f32 %v769_v11, %v563_v63  ;;  %v936_v22 = vmul.f32 %v779_v16, %v779_v16  ;;  %v842_v32 = vadd.f32 %v779_v16, %v714_v15 }
 0x18a   : > { %v929_v35 = vmul.f32 %v705_v10, %v705_v10 }
 0x18b   : > { %v833_v17 = vadd.f32 %v770_v12, %v705_v10  ;;  %v971_v31 = vadd.f32 %v936_v22, %v935_v21  ;;  %v930_v38 = vmul.f32 %v770_v12, %v770_v12 }
 0x18d   : > { %834 = vadd.xlane.f32.xlu1 %v833_v17  ;;  %960 = vadd.xlane.f32.xlu0 %v959_v18  ;;  %v716_v19 = vpop.f32.mrf.mxu2  ;;  %v962_v47 = vadd.f32 %v930_v38, %v929_v35  ;;  %v618_v38 = vpop.permute.xlu2 %617 }
 0x18e   : > { %v781_v20 = vpop.f32.mrf.mxu3  ;;  %v717_v28 = vadd.f32 %v716_v19, %v583_v27  ;;  %v608_v19 = vpop.permute.xlu0 %607 }
 0x18f   : > { %v707_v23 = vpop.f32.mrf.mxu0  ;;  %v782_v29 = vadd.f32 %v781_v20, %v583_v27 }
 0x190   : > { %v708_v24 = vadd.f32 %v707_v23, %v568_v9  ;;  %v772_v25 = vpop.f32.mrf.mxu1  ;;  %v937_v39 = vmul.f32 %v717_v28, %v717_v28 }
 0x191   : > { %v773_v26 = vadd.f32 %v772_v25, %v568_v9  ;;  %v938_v40 = vmul.f32 %v782_v29, %v782_v29  ;;  %v845_v61 = vadd.f32 %v782_v29, %v717_v28 }
 0x192   : > { %v931_v53 = vmul.f32 %v708_v24, %v708_v24 }
 0x193   : > { %v836_v30 = vadd.f32 %v773_v26, %v708_v24  ;;  %v974_v46 = vadd.f32 %v938_v40, %v937_v39  ;;  %v932_v54 = vmul.f32 %v773_v26, %v773_v26 }
 0x195   : > { %837 = vadd.xlane.f32.xlu2 %v836_v30  ;;  %972 = vadd.xlane.f32.xlu1 %v971_v31  ;;  %v719_v34 = vpop.f32.mrf.mxu2  ;;  %v965_v60 = vadd.f32 %v932_v54, %v931_v53 }
 0x196   : > { %843 = vadd.xlane.f32.xlu0 %v842_v32  ;;  %v720_v36 = vadd.f32 %v719_v34, %v588_v33  ;;  %v784_v37 = vpop.f32.mrf.mxu3  ;;  %v613_v32 = vpop.permute.xlu1 %612 }
 0x197   : > { %v785_v41 = vadd.f32 %v784_v37, %v588_v33  ;;  %v710_v44 = vpop.f32.mrf.mxu0 }
 0x198   : > { %v939_v42 = vmul.f32 %v720_v36, %v720_v36  ;;  %v775_v45 = vpop.f32.mrf.mxu1  ;;  %v711_v49 = vadd.f32 %v710_v44, %v573_v14 }
 0x199   : > { %v940_v43 = vmul.f32 %v785_v41, %v785_v41  ;;  %v776_v50 = vadd.f32 %v775_v45, %v573_v14  ;;  %v848_v3 = vadd.f32 %v785_v41, %v720_v36 }
 0x19a   : > { %v933_v55 = vmul.f32 %v711_v49, %v711_v49 }
 0x19b   : > { %v977_v48 = vadd.f32 %v940_v43, %v939_v42  ;;  %v934_v56 = vmul.f32 %v776_v50, %v776_v50  ;;  %v839_v16 = vadd.f32 %v776_v50, %v711_v49  ;;  %v623_v50 = vpop.permute.xlu0 %622 }
 0x19d   : > { %975 = vadd.xlane.f32.xlu2 %v974_v46  ;;  %963 = vadd.xlane.f32.xlu1 %v962_v47  ;;  %v722_v51 = vpop.f32.mrf.mxu2  ;;  %v968_v62 = vadd.f32 %v934_v56, %v933_v55 }
 0x19e   : > { %978 = vadd.xlane.f32.xlu0 %v977_v48  ;;  %v787_v52 = vpop.f32.mrf.mxu3  ;;  %v723_v58 = vadd.f32 %v722_v51, %v593_v57  ;;  %v628_v56 = vpop.permute.xlu1 %627 }
 0x19f   : > { %v788_v59 = vadd.f32 %v787_v52, %v593_v57 }
 0x1a0   : > { %v941_v1 = vmul.f32 %v723_v58, %v723_v58 }
 0x1a1   : > { %v942_v2 = vmul.f32 %v788_v59, %v788_v59  ;;  %v851_v5 = vadd.f32 %v788_v59, %v723_v58 }
 0x1a3   : > { %v980_v4 = vadd.f32 %v942_v2, %v941_v1 }
 0x1a5   : > { %966 = vadd.xlane.f32.xlu2 %v965_v60  ;;  %846 = vadd.xlane.f32.xlu1 %v845_v61  ;;  %v725_v63 = vpop.f32.mrf.mxu2 }
 0x1a6   : > { %969 = vadd.xlane.f32.xlu0 %v968_v62  ;;  %v790_v0 = vpop.f32.mrf.mxu3  ;;  %v726_v11 = vadd.f32 %v725_v63, %v598_v8  ;;  %v633_v62 = vpop.permute.xlu2 %632 }
 0x1a7   : > { %v791_v12 = vadd.f32 %v790_v0, %v598_v8 }
 0x1a8   : > { %v943_v23 = vmul.f32 %v726_v11, %v726_v11 }
 0x1a9   : > { %v854_v17 = vadd.f32 %v791_v12, %v726_v11  ;;  %v944_v24 = vmul.f32 %v791_v12, %v791_v12 }
 0x1ab   : > { %v983_v28 = vadd.f32 %v944_v24, %v943_v23  ;;  %v915_v23 = vld [vmem:[%s1853_s6 + $0x20] sm:$0xff] }
 0x1ac   : > { %v818_v24 = vld [vmem:[%s1852_s5 + $0x20] sm:$0xff] }
 0x1ad   : > { %849 = vadd.xlane.f32.xlu2 %v848_v3  ;;  %981 = vadd.xlane.f32.xlu1 %v980_v4  ;;  %v728_v7 = vpop.f32.mrf.mxu2 }
 0x1ae   : > { %852 = vadd.xlane.f32.xlu0 %v851_v5  ;;  %v729_v9 = vadd.f32 %v728_v7, %v603_v6  ;;  %v793_v10 = vpop.f32.mrf.mxu3 }
 0x1af   : > { %v794_v13 = vadd.f32 %v793_v10, %v603_v6 }
 0x1b0   : > { %v945_v14 = vmul.f32 %v729_v9, %v729_v9 }
 0x1b1   : > { %v946_v15 = vmul.f32 %v794_v13, %v794_v13  ;;  %v857_v36 = vadd.f32 %v794_v13, %v729_v9  ;;  %v814_v13 = vld [vmem:[%s1852_s5] sm:$0xff] }
 0x1b3   : > { %v986_v18 = vadd.f32 %v946_v15, %v945_v14 }
 0x1b5   : > { %840 = vadd.xlane.f32.xlu2 %v839_v16  ;;  %855 = vadd.xlane.f32.xlu1 %v854_v17  ;;  %v731_v20 = vpop.f32.mrf.mxu2  ;;  %v815_v16 = vld [vmem:[%s1852_s5 + $0x8] sm:$0xff]  ;;  %v911_v17 = vld [vmem:[%s1853_s6] sm:$0xff] }
 0x1b6   : > { %987 = vadd.xlane.f32.xlu0 %v986_v18  ;;  %v732_v21 = vadd.f32 %v731_v20, %v608_v19  ;;  %v796_v22 = vpop.f32.mrf.mxu3 }
 0x1b7   : > { %v797_v25 = vadd.f32 %v796_v22, %v608_v19  ;;  %v816_v22 = vld [vmem:[%s1852_s5 + $0x10] sm:$0xff] }
 0x1b8   : > { %v947_v26 = vmul.f32 %v732_v21, %v732_v21 }
 0x1b9   : > { %v948_v27 = vmul.f32 %v797_v25, %v797_v25  ;;  %v860_v30 = vadd.f32 %v797_v25, %v732_v21 }
 0x1bb   : > { %v989_v29 = vadd.f32 %v948_v27, %v947_v26 }
 0x1bd   : > { %984 = vadd.xlane.f32.xlu2 %v983_v28  ;;  %990 = vadd.xlane.f32.xlu1 %v989_v29  ;;  %v734_v31 = vpop.f32.mrf.mxu2 }
 0x1be   : > { %861 = vadd.xlane.f32.xlu0 %v860_v30  ;;  %v799_v33 = vpop.f32.mrf.mxu3  ;;  %v735_v34 = vadd.f32 %v734_v31, %v613_v32  ;;  %v916_v31 = vld [vmem:[%s1853_s6 + $0x28] sm:$0xff] }
 0x1bf   : > { %v800_v35 = vadd.f32 %v799_v33, %v613_v32  ;;  %v912_v32 = vld [vmem:[%s1853_s6 + $0x8] sm:$0xff]  ;;  %v917_v33 = vld [vmem:[%s1853_s6 + $0x30] sm:$0xff] }
 0x1c0   : > { %v949_v42 = vmul.f32 %v735_v34, %v735_v34 }
 0x1c1   : > { %v863_v37 = vadd.f32 %v800_v35, %v735_v34  ;;  %v950_v43 = vmul.f32 %v800_v35, %v800_v35 }
 0x1c3   : > { %v992_v47 = vadd.f32 %v950_v43, %v949_v42  ;;  %v914_v42 = vld [vmem:[%s1853_s6 + $0x18] sm:$0xff] }
 0x1c5   : > { %858 = vadd.xlane.f32.xlu2 %v857_v36  ;;  %864 = vadd.xlane.f32.xlu1 %v863_v37  ;;  %v737_v39 = vpop.f32.mrf.mxu2 }
 0x1c6   : > { %v738_v40 = vadd.f32 %v737_v39, %v618_v38  ;;  %v802_v41 = vpop.f32.mrf.mxu3 }
 0x1c7   : > { %v803_v44 = vadd.f32 %v802_v41, %v618_v38  ;;  %v819_v41 = vld [vmem:[%s1852_s5 + $0x28] sm:$0xff] }
 0x1c8   : > { %v951_v45 = vmul.f32 %v738_v40, %v738_v40 }
 0x1c9   : > { %v952_v46 = vmul.f32 %v803_v44, %v803_v44  ;;  %v866_v54 = vadd.f32 %v803_v44, %v738_v40  ;;  %v913_v40 = vld [vmem:[%s1853_s6 + $0x10] sm:$0xff] }
 0x1cb   : > { %v995_v48 = vadd.f32 %v952_v46, %v951_v45 }
 0x1cd   : > { %993 = vadd.xlane.f32.xlu2 %v992_v47  ;;  %996 = vadd.xlane.f32.xlu0 %v995_v48  ;;  %v740_v49 = vpop.f32.mrf.mxu2 }
 0x1ce   : > { %v805_v51 = vpop.f32.mrf.mxu3  ;;  %v741_v52 = vadd.f32 %v740_v49, %v623_v50  ;;  %v820_v49 = vld [vmem:[%s1852_s5 + $0x30] sm:$0xff] }
 0x1cf   : > { %v806_v53 = vadd.f32 %v805_v51, %v623_v50  ;;  %v918_v50 = vld [vmem:[%s1853_s6 + $0x38] sm:$0xff] }
 0x1d0   : > { %v953_v63 = vmul.f32 %v741_v52, %v741_v52  ;;  %v821_v51 = vld [vmem:[%s1852_s5 + $0x38] sm:$0xff] }
 0x1d1   : > { %v869_v55 = vadd.f32 %v806_v53, %v741_v52  ;;  %v954_v0 = vmul.f32 %v806_v53, %v806_v53 }
 0x1d3   : > { %v998_v8 = vadd.f32 %v954_v0, %v953_v63 }
 0x1d5   : > { %867 = vadd.xlane.f32.xlu2 %v866_v54  ;;  %870 = vadd.xlane.f32.xlu0 %v869_v55  ;;  %v743_v57 = vpop.f32.mrf.mxu2 }
 0x1d6   : > { %v744_v58 = vadd.f32 %v743_v57, %v628_v56  ;;  %v808_v59 = vpop.f32.mrf.mxu3 }
 0x1d7   : > { %v809_v60 = vadd.f32 %v808_v59, %v628_v56  ;;  %v822_v59 = vld [vmem:[%s1852_s5 + $0x40] sm:$0xff] }
 0x1d8   : > { %v955_v10 = vmul.f32 %v744_v58, %v744_v58 }
 0x1d9   : > { %v872_v61 = vadd.f32 %v809_v60, %v744_v58  ;;  %v956_v11 = vmul.f32 %v809_v60, %v809_v60  ;;  %v817_v58 = vld [vmem:[%s1852_s5 + $0x18] sm:$0xff]  ;;  %v920_v60 = vld [vmem:[%s1853_s6 + $0x48] sm:$0xff] }
 0x1db   : > { %873 = vadd.xlane.f32.xlu1 %v872_v61  ;;  %v1001_v12 = vadd.f32 %v956_v11, %v955_v10 }
 0x1dd   : > { %v746_v1 = vpop.f32.mrf.mxu2 }
 0x1de   : > { %v747_v2 = vadd.f32 %v746_v1, %v633_v62  ;;  %v811_v3 = vpop.f32.mrf.mxu3 }
 0x1df   : > { %v812_v4 = vadd.f32 %v811_v3, %v633_v62  ;;  %v919_v3 = vld [vmem:[%s1853_s6 + $0x40] sm:$0xff] }
 0x1e0   : > { %v957_v5 = vmul.f32 %v747_v2, %v747_v2 }
 0x1e1   : > { %v958_v6 = vmul.f32 %v812_v4, %v812_v4  ;;  %v875_v7 = vadd.f32 %v812_v4, %v747_v2  ;;  %v921_v4 = vld [vmem:[%s1853_s6 + $0x50] sm:$0xff] }
 0x1e3   : > { %876 = vadd.xlane.f32.xlu2 %v875_v7  ;;  %999 = vadd.xlane.f32.xlu1 %v998_v8  ;;  %v1004_v9 = vadd.f32 %v958_v6, %v957_v5  ;;  %v824_v5 = vld [vmem:[%s1852_s5 + $0x50] sm:$0xff] }
 0x1e5   : > { %1005 = vadd.xlane.f32.xlu0 %v1004_v9 }
 0x1eb   : > { %1002 = vadd.xlane.f32.xlu2 %v1001_v12  ;;  %v823_v12 = vld [vmem:[%s1852_s5 + $0x48] sm:$0xff] }
 0x1f8   : > { %v832_v14 = vpop.xlane.xlu0 %831 }
 0x1f9   : > { %v878_v15 = vadd.f32 %v832_v14, %v814_v13  ;;  %v825_v13 = vld [vmem:[%s1852_s5 + $0x58] sm:$0xff] }
 0x1fb   : > { %895 = vst.msk [vmem:[%s1852_s5] sm:$0xff] %vm894_vm4, %v878_v15 }
 0x200   : > { %v835_v18 = vpop.xlane.xlu1 %834  ;;  %v961_v19 = vpop.xlane.xlu0 %960 }
 0x201   : > { %v879_v20 = vadd.f32 %v835_v18, %v815_v16  ;;  %v1007_v21 = vadd.f32 %v961_v19, %v911_v17  ;;  %v922_v18 = vld [vmem:[%s1853_s6 + $0x58] sm:$0xff]  ;;  %v923_v19 = vld [vmem:[%s1853_s6 + $0x60] sm:$0xff] }
 0x203   : > { %896 = vst.msk [vmem:[%s1852_s5 + $0x8] sm:$0xff] %vm894_vm4, %v879_v20 }
 0x204   : > { %1023 = vst.msk [vmem:[%s1853_s6] sm:$0xff] %vm894_vm4, %v1007_v21 }
 0x208   : > { %v838_v25 = vpop.xlane.xlu2 %837  ;;  %v973_v26 = vpop.xlane.xlu1 %972 }
 0x209   : > { %v880_v27 = vadd.f32 %v838_v25, %v816_v22  ;;  %v1011_v28 = vadd.f32 %v973_v26, %v915_v23  ;;  %v844_v29 = vpop.xlane.xlu0 %843  ;;  %v827_v25 = vld [vmem:[%s1852_s5 + $0x68] sm:$0xff] }
 0x20a   : > { %v882_v30 = vadd.f32 %v844_v29, %v818_v24  ;;  %v826_v24 = vld [vmem:[%s1852_s5 + $0x60] sm:$0xff] }
 0x20b   : > { %897 = vst.msk [vmem:[%s1852_s5 + $0x10] sm:$0xff] %vm894_vm4, %v880_v27 }
 0x20c   : > { %1027 = vst.msk [vmem:[%s1853_s6 + $0x20] sm:$0xff] %vm894_vm4, %v1011_v28 }
 0x20d   : > { %899 = vst.msk [vmem:[%s1852_s5 + $0x20] sm:$0xff] %vm894_vm4, %v882_v30  ;;  %v828_v30 = vld [vmem:[%s1852_s5 + $0x70] sm:$0xff] }
 0x210   : > { %v976_v34 = vpop.xlane.xlu2 %975  ;;  %v964_v35 = vpop.xlane.xlu1 %963 }
 0x211   : > { %v1012_v36 = vadd.f32 %v976_v34, %v916_v31  ;;  %v1008_v37 = vadd.f32 %v964_v35, %v912_v32  ;;  %v979_v38 = vpop.xlane.xlu0 %978  ;;  %v924_v34 = vld [vmem:[%s1853_s6 + $0x68] sm:$0xff] }
 0x212   : > { %v1013_v39 = vadd.f32 %v979_v38, %v917_v33  ;;  %v829_v33 = vld [vmem:[%s1852_s5 + $0x78] sm:$0xff] }
 0x213   : > { %1028 = vst.msk [vmem:[%s1853_s6 + $0x28] sm:$0xff] %vm894_vm4, %v1012_v36 }
 0x214   : > { %1024 = vst.msk [vmem:[%s1853_s6 + $0x8] sm:$0xff] %vm894_vm4, %v1008_v37  ;;  %v926_v37 = vld [vmem:[%s1853_s6 + $0x78] sm:$0xff] }
 0x215   : > { %1029 = vst.msk [vmem:[%s1853_s6 + $0x30] sm:$0xff] %vm894_vm4, %v1013_v39 }
 0x218   : > { %v967_v43 = vpop.xlane.xlu2 %966  ;;  %v847_v44 = vpop.xlane.xlu1 %846 }
 0x219   : > { %v1009_v45 = vadd.f32 %v967_v43, %v913_v40  ;;  %v883_v46 = vadd.f32 %v847_v44, %v819_v41  ;;  %v970_v47 = vpop.xlane.xlu0 %969 }
 0x21a   : > { %v1010_v48 = vadd.f32 %v970_v47, %v914_v42  ;;  %v925_v42 = vld [vmem:[%s1853_s6 + $0x70] sm:$0xff] }
 0x21b   : > { %1025 = vst.msk [vmem:[%s1853_s6 + $0x10] sm:$0xff] %vm894_vm4, %v1009_v45 }
 0x21c   : > { %900 = vst.msk [vmem:[%s1852_s5 + $0x28] sm:$0xff] %vm894_vm4, %v883_v46 }
 0x21d   : > { %1026 = vst.msk [vmem:[%s1853_s6 + $0x18] sm:$0xff] %vm894_vm4, %v1010_v48 }
 0x220   : > { %v850_v52 = vpop.xlane.xlu2 %849  ;;  %v982_v53 = vpop.xlane.xlu1 %981 }
 0x221   : > { %v884_v54 = vadd.f32 %v850_v52, %v820_v49  ;;  %v1014_v55 = vadd.f32 %v982_v53, %v918_v50  ;;  %v853_v56 = vpop.xlane.xlu0 %852 }
 0x222   : > { %v885_v57 = vadd.f32 %v853_v56, %v821_v51 }
 0x223   : > { %901 = vst.msk [vmem:[%s1852_s5 + $0x30] sm:$0xff] %vm894_vm4, %v884_v54 }
 0x224   : > { %1030 = vst.msk [vmem:[%s1853_s6 + $0x38] sm:$0xff] %vm894_vm4, %v1014_v55 }
 0x225   : > { %902 = vst.msk [vmem:[%s1852_s5 + $0x38] sm:$0xff] %vm894_vm4, %v885_v57 }
 0x228   : > { %v841_v61 = vpop.xlane.xlu2 %840  ;;  %v856_v62 = vpop.xlane.xlu1 %855 }
 0x229   : > { %v881_v63 = vadd.f32 %v841_v61, %v817_v58  ;;  %v886_v0 = vadd.f32 %v856_v62, %v822_v59  ;;  %v988_v1 = vpop.xlane.xlu0 %987 }
 0x22a   : > { %v1016_v2 = vadd.f32 %v988_v1, %v920_v60 }
 0x22b   : > { %898 = vst.msk [vmem:[%s1852_s5 + $0x18] sm:$0xff] %vm894_vm4, %v881_v63 }
 0x22c   : > { %903 = vst.msk [vmem:[%s1852_s5 + $0x40] sm:$0xff] %vm894_vm4, %v886_v0 }
 0x22d   : > { %1032 = vst.msk [vmem:[%s1853_s6 + $0x48] sm:$0xff] %vm894_vm4, %v1016_v2 }
 0x230   : > { %v985_v6 = vpop.xlane.xlu2 %984  ;;  %v991_v7 = vpop.xlane.xlu1 %990 }
 0x231   : > { %v1015_v8 = vadd.f32 %v985_v6, %v919_v3  ;;  %v1017_v9 = vadd.f32 %v991_v7, %v921_v4  ;;  %v862_v10 = vpop.xlane.xlu0 %861 }
 0x232   : > { %v888_v11 = vadd.f32 %v862_v10, %v824_v5 }
 0x233   : > { %1031 = vst.msk [vmem:[%s1853_s6 + $0x40] sm:$0xff] %vm894_vm4, %v1015_v8 }
 0x234   : > { %1033 = vst.msk [vmem:[%s1853_s6 + $0x50] sm:$0xff] %vm894_vm4, %v1017_v9 }
 0x235   : > { %905 = vst.msk [vmem:[%s1852_s5 + $0x50] sm:$0xff] %vm894_vm4, %v888_v11 }
 0x238   : > { %v859_v14 = vpop.xlane.xlu2 %858  ;;  %v865_v15 = vpop.xlane.xlu1 %864 }
 0x239   : > { %v887_v16 = vadd.f32 %v859_v14, %v823_v12  ;;  %v889_v17 = vadd.f32 %v865_v15, %v825_v13 }
 0x23b   : > { %904 = vst.msk [vmem:[%s1852_s5 + $0x48] sm:$0xff] %vm894_vm4, %v887_v16 }
 0x23c   : > { %906 = vst.msk [vmem:[%s1852_s5 + $0x58] sm:$0xff] %vm894_vm4, %v889_v17 }
 0x240   : > { %v994_v20 = vpop.xlane.xlu2 %993  ;;  %v997_v21 = vpop.xlane.xlu0 %996 }
 0x241   : > { %v1018_v22 = vadd.f32 %v994_v20, %v922_v18  ;;  %v1019_v23 = vadd.f32 %v997_v21, %v923_v19 }
 0x243   : > { %1034 = vst.msk [vmem:[%s1853_s6 + $0x58] sm:$0xff] %vm894_vm4, %v1018_v22 }
 0x244   : > { %1035 = vst.msk [vmem:[%s1853_s6 + $0x60] sm:$0xff] %vm894_vm4, %v1019_v23 }
 0x248   : > { %v868_v26 = vpop.xlane.xlu2 %867  ;;  %v871_v27 = vpop.xlane.xlu0 %870 }
 0x249   : > { %v890_v28 = vadd.f32 %v868_v26, %v826_v24  ;;  %v891_v29 = vadd.f32 %v871_v27, %v827_v25 }
 0x24b   : > { %907 = vst.msk [vmem:[%s1852_s5 + $0x60] sm:$0xff] %vm894_vm4, %v890_v28 }
 0x24c   : > { %908 = vst.msk [vmem:[%s1852_s5 + $0x68] sm:$0xff] %vm894_vm4, %v891_v29 }
 0x24e   : > { %v874_v31 = vpop.xlane.xlu1 %873 }
 0x24f   : > { %v892_v32 = vadd.f32 %v874_v31, %v828_v30 }
 0x251   : > { %909 = vst.msk [vmem:[%s1852_s5 + $0x70] sm:$0xff] %vm894_vm4, %v892_v32 }
 0x256   : > { %v877_v35 = vpop.xlane.xlu2 %876  ;;  %v1000_v36 = vpop.xlane.xlu1 %999 }
 0x257   : > { %v893_v38 = vadd.f32 %v877_v35, %v829_v33  ;;  %v1020_v39 = vadd.f32 %v1000_v36, %v924_v34 }
 0x258   : > { %v1006_v40 = vpop.xlane.xlu0 %1005 }
 0x259   : > { %910 = vst.msk [vmem:[%s1852_s5 + $0x78] sm:$0xff] %vm894_vm4, %v893_v38  ;;  %v1022_v41 = vadd.f32 %v1006_v40, %v926_v37 }
 0x25a   : > { %1036 = vst.msk [vmem:[%s1853_s6 + $0x68] sm:$0xff] %vm894_vm4, %v1020_v39 }
 0x25b   : > { %1038 = vst.msk [vmem:[%s1853_s6 + $0x78] sm:$0xff] %vm894_vm4, %v1022_v41 }
 0x25e   : > { %v1003_v43 = vpop.xlane.xlu2 %1002 }
 0x25f   : > { %v1021_v44 = vadd.f32 %v1003_v43, %v925_v42 }
 0x261   : > { %1037 = vst.msk [vmem:[%s1853_s6 + $0x70] sm:$0xff] %vm894_vm4, %v1021_v44 }
 0x262 PF: > { %s17_s23 = sadd.s32 1, %s1215_s23   ;;  %s1854_s21 = smov %s1211_s22 }
 0x263   : > { %p14_p6 = scmp.ge.s32.totalorder %s17_s23, 4   ;;  %s1855_s22 = smov %s1857_s24 }
 0x265   :  { %16 = sbr.rel (!%p14_p6) target bundleno = 2 (0x2), region = 78 }

</bundles_post_ra>
